<compile_context>
chip_gen: v6e
topology: v6e:2x2x1
jax: 0.10.0
libtpu: 0.0.40
codegen_flags: <defaults>
</compile_context>

<pallas_src>
import jax
import jax.numpy as jnp
from jax.experimental import pallas as pl
from jax.experimental.pallas import tpu as pltpu


_NUM_SPLITS = 2                          # leading "parallel" grid axis (2 TCs on v7x)
_TARGET_BLOCK_BYTES = 8 * 1024 * 1024    # ~8 MiB of f32 per input per grid step
_VMEM_LIMIT_BYTES = 48 * 1024 * 1024     # fits 2 inputs x 2 buffers x 8 MiB everywhere


def _make_mse_kernel(rows_block, cols, n_rows, n_blocks, blocks_per_split):
    """Builds the kernel with all tiling parameters baked in statically."""
    need_row_mask = (n_rows % rows_block) != 0
    need_block_guard = (blocks_per_split * _NUM_SPLITS) != n_blocks

    def kernel(x_ref, t_ref, out_ref, acc_ref):
        c = pl.program_id(0)                 # parallel split (TensorCore on v7x)
        i = pl.program_id(1)                 # serial block index within the split
        b = c * blocks_per_split + i         # global row-block index

        @pl.when(i == 0)
        def _():
            acc_ref[...] = jnp.zeros_like(acc_ref)

        def accumulate():
            d = x_ref[...].astype(jnp.float32) - t_ref[...].astype(jnp.float32)
            if need_row_mask:
                # Mask rows past the true row count (partial last block).
                row = b * rows_block + jax.lax.broadcasted_iota(
                    jnp.int32, (rows_block, cols), 0)
                d = jnp.where(row < n_rows, d, 0.0)
            # Per-lane partial sums: pure VPU adds each step; the cross-lane
            # reduction happens only once, in the epilogue below.
            acc_ref[...] += jnp.sum(d * d, axis=0, keepdims=True)

        if need_block_guard:
            # Skip duplicate (clamped) blocks when n_blocks doesn't split evenly
            # across the parallel axis.
            pl.when(b < n_blocks)(accumulate)
        else:
            accumulate()

        @pl.when(i == blocks_per_split - 1)
        def _():
            out_ref[...] = jnp.sum(
                acc_ref[...], axis=-1, keepdims=True).reshape(1, 1, 1)

    return kernel


def _mse_loss_impl(x, target):
    assert x.shape == target.shape
    total = x.size

    xf = x.reshape(-1)
    tf = target.reshape(-1)

    # Lane-dense column count (multiple of 128) that divides the flat length,
    # so the reshape below is layout-preserving and free (no jnp.pad path).
    cols = None
    for cand in (512, 256, 128):
        if total % cand == 0:
            cols = cand
            break
    if cols is None:
        # TODO(synk): rare fallback for totals not divisible by 128 — pads both
        # flat operands (extra HBM copy); zero padding contributes 0 to the sum.
        cols = 128
        padded = pl.cdiv(total, cols) * cols
        xf = jnp.pad(xf, (0, padded - total))
        tf = jnp.pad(tf, (0, padded - total))
    else:
        padded = total

    n_rows = padded // cols
    rows_target = max(8, _TARGET_BLOCK_BYTES // (4 * cols))
    if rows_target >= n_rows:
        rows_block = n_rows                      # single block: full extent is legal
    else:
        rows_block = (rows_target // 8) * 8      # keep sublane-aligned
    n_blocks = pl.cdiv(n_rows, rows_block)
    blocks_per_split = pl.cdiv(n_blocks, _NUM_SPLITS)

    x2 = xf.reshape(n_rows, cols)
    t2 = tf.reshape(n_rows, cols)

    kernel = _make_mse_kernel(rows_block, cols, n_rows, n_blocks, blocks_per_split)

    def in_map(c, i):
        # Clamp so trailing (skipped) grid steps never address past the array.
        return (jnp.minimum(c * blocks_per_split + i, n_blocks - 1), 0)

    partial_sums = pl.pallas_call(
        kernel,
        out_shape=jax.ShapeDtypeStruct((_NUM_SPLITS, 1, 1), jnp.float32),
        grid=(_NUM_SPLITS, blocks_per_split),
        in_specs=[
            pl.BlockSpec((rows_block, cols), in_map),
            pl.BlockSpec((rows_block, cols), in_map),
        ],
        out_specs=pl.BlockSpec((1, 1, 1), lambda c, i: (c, 0, 0)),
        scratch_shapes=[pltpu.VMEM((1, cols), jnp.float32)],
        compiler_params=pltpu.CompilerParams(
            dimension_semantics=("parallel", "arbitrary"),
            vmem_limit_bytes=_VMEM_LIMIT_BYTES,
        ),
    )(x2, t2)

    return jnp.sum(partial_sums) / jnp.float32(total)


# jit the whole path (reshape -> pallas_call -> combine -> divide) so nothing
# dispatches eagerly around the kernel.
mse_loss_pallas = jax.jit(_mse_loss_impl)


class ContentLoss:
    """JAX/Pallas mirror of the PyTorch ContentLoss module."""

    def __init__(self, target):
        self.target = jax.lax.stop_gradient(target)  # .detach()
        self.loss = None

    def __call__(self, x):
        # forward: compute MSE vs. stored target, return input unchanged.
        # TODO(synk): no custom_vjp is defined; jax.grad through the Pallas MSE
        # is unsupported (PyTorch-side backprop would need grad = 2*(x-t)/N).
        self.loss = mse_loss_pallas(x, self.target)
        return x


def content_loss_ref(x, target):
    return jnp.mean((x - target) ** 2)


if __name__ == "__main__":
    key = jax.random.PRNGKey(0)
    k_x, k_t = jax.random.split(key, 2)

    N, C, H, W = 2, 4, 16, 16
    x = jax.random.normal(k_x, (N, C, H, W), dtype=jnp.float32)
    target = jax.random.normal(k_t, (N, C, H, W), dtype=jnp.float32)

    module = ContentLoss(target)
    out = module(x)
    out = jax.block_until_ready(out)
    loss = jax.block_until_ready(module.loss)

    ref_loss = content_loss_ref(x, target)
    assert out.shape == (N, C, H, W)
    assert jnp.array_equal(out, x)  # forward returns the input unchanged
    assert jnp.allclose(loss, ref_loss, atol=1e-5, rtol=1e-5)

    print("KERNEL_OK")
</pallas_src>

<mosaic_0001>
module attributes {stable_mosaic.version = 11 : i64} {
  func.func @kernel(%arg0: i32, %arg1: i32, %arg2: memref<4x512xf32, #tpu.memory_space<vmem>>, %arg3: memref<4x512xf32, #tpu.memory_space<vmem>>, %arg4: memref<1x1x1xf32, #tpu.memory_space<vmem>>, %arg5: memref<1x512xf32, #tpu.memory_space<vmem>>) attributes {dimension_semantics = [#tpu.dimension_semantics<parallel>, #tpu.dimension_semantics<arbitrary>], iteration_bounds = array<i64: 2, 1>, scalar_prefetch = 0 : i64, scratch_operands = 1 : i64, tpu.core_type = #tpu.core_type<tc>, window_params = [{transform_indices = @transform_0, window_bounds = array<i64: 4, 512>}, {transform_indices = @transform_1, window_bounds = array<i64: 4, 512>}, {transform_indices = @transform_2, window_bounds = array<i64: 1, 1, 1>}]} {
    %c1_i32 = arith.constant 1 : i32
    %0 = arith.muli %arg0, %c1_i32 : i32
    %1 = arith.addi %0, %arg1 : i32
    %c0_i32 = arith.constant 0 : i32
    %2 = arith.cmpi eq, %arg1, %c0_i32 : i32
    %3 = arith.extui %2 : i1 to i32
    %c0_i32_0 = arith.constant 0 : i32
    %4 = arith.cmpi ne, %3, %c0_i32_0 : i32
    scf.if %4 {
      %cst = arith.constant 0.000000e+00 : f32
      %11 = vector.broadcast %cst : f32 to vector<1x512xf32>
      %c0 = arith.constant 0 : index
      %c0_5 = arith.constant 0 : index
      %12 = vector.load %arg5[%c0, %c0_5] : memref<1x512xf32, #tpu.memory_space<vmem>>, vector<1x512xf32>
      tpu.vector_store %arg5[%c0, %c0_5], %11 {strides = array<i32>} : memref<1x512xf32, #tpu.memory_space<vmem>>, vector<1x512xf32>,
    } else {
    }
    %c1_i32_1 = arith.constant 1 : i32
    %5 = arith.cmpi slt, %1, %c1_i32_1 : i32
    %6 = arith.extui %5 : i1 to i32
    %c0_i32_2 = arith.constant 0 : i32
    %7 = arith.cmpi ne, %6, %c0_i32_2 : i32
    scf.if %7 {
      %c0 = arith.constant 0 : index
      %c0_5 = arith.constant 0 : index
      %11 = vector.load %arg2[%c0, %c0_5] : memref<4x512xf32, #tpu.memory_space<vmem>>, vector<4x512xf32>
      %c0_6 = arith.constant 0 : index
      %c0_7 = arith.constant 0 : index
      %12 = vector.load %arg3[%c0_6, %c0_7] : memref<4x512xf32, #tpu.memory_space<vmem>>, vector<4x512xf32>
      %13 = arith.subf %11, %12 : vector<4x512xf32>
      %c0_8 = arith.constant 0 : index
      %c0_9 = arith.constant 0 : index
      %14 = vector.load %arg5[%c0_8, %c0_9] : memref<1x512xf32, #tpu.memory_space<vmem>>, vector<1x512xf32>
      %15 = arith.mulf %13, %13 : vector<4x512xf32>
      %cst = arith.constant dense<0.000000e+00> : vector<512xf32>
      %16 = vector.multi_reduction <add>, %15, %cst [0] : vector<4x512xf32> to vector<512xf32>
      %17 = vector.shape_cast %16 : vector<512xf32> to vector<1x512xf32>
      %18 = arith.addf %14, %17 : vector<1x512xf32>
      %c0_10 = arith.constant 0 : index
      %c0_11 = arith.constant 0 : index
      %19 = vector.load %arg5[%c0_10, %c0_11] : memref<1x512xf32, #tpu.memory_space<vmem>>, vector<1x512xf32>
      tpu.vector_store %arg5[%c0_10, %c0_11], %18 {strides = array<i32>} : memref<1x512xf32, #tpu.memory_space<vmem>>, vector<1x512xf32>,
    } else {
    }
    %c0_i32_3 = arith.constant 0 : i32
    %8 = arith.cmpi eq, %arg1, %c0_i32_3 : i32
    %9 = arith.extui %8 : i1 to i32
    %c0_i32_4 = arith.constant 0 : i32
    %10 = arith.cmpi ne, %9, %c0_i32_4 : i32
    scf.if %10 {
      %c0 = arith.constant 0 : index
      %c0_5 = arith.constant 0 : index
      %11 = vector.load %arg5[%c0, %c0_5] : memref<1x512xf32, #tpu.memory_space<vmem>>, vector<1x512xf32>
      %cst = arith.constant dense<0.000000e+00> : vector<1xf32>
      %12 = vector.multi_reduction <add>, %11, %cst [1] : vector<1x512xf32> to vector<1xf32>
      %13 = vector.shape_cast %12 : vector<1xf32> to vector<1x1xf32>
      %14 = vector.shape_cast %13 : vector<1x1xf32> to vector<1x1x1xf32>
      %c0_6 = arith.constant 0 : index
      %c0_7 = arith.constant 0 : index
      %c0_8 = arith.constant 0 : index
      %15 = vector.load %arg4[%c0_6, %c0_7, %c0_8] : memref<1x1x1xf32, #tpu.memory_space<vmem>>, vector<1x1x1xf32>
      tpu.vector_store %arg4[%c0_6, %c0_7, %c0_8], %14 {strides = array<i32>} : memref<1x1x1xf32, #tpu.memory_space<vmem>>, vector<1x1x1xf32>,
    } else {
    }
    return
  }
  func.func @transform_0(%arg0: i32, %arg1: i32) -> (i32, i32) {
    %c1_i32 = arith.constant 1 : i32
    %0 = arith.muli %arg0, %c1_i32 : i32
    %1 = arith.addi %0, %arg1 : i32
    %c0_i32 = arith.constant 0 : i32
    %2 = arith.minsi %1, %c0_i32 : i32
    %c0_i32_0 = arith.constant 0 : i32
    %c0_i32_1 = arith.constant 0 : i32
    return %2, %c0_i32_0 : i32, i32
  }
  func.func @transform_1(%arg0: i32, %arg1: i32) -> (i32, i32) {
    %c1_i32 = arith.constant 1 : i32
    %0 = arith.muli %arg0, %c1_i32 : i32
    %1 = arith.addi %0, %arg1 : i32
    %c0_i32 = arith.constant 0 : i32
    %2 = arith.minsi %1, %c0_i32 : i32
    %c0_i32_0 = arith.constant 0 : i32
    %c0_i32_1 = arith.constant 0 : i32
    return %2, %c0_i32_0 : i32, i32
  }
  func.func @transform_2(%arg0: i32, %arg1: i32) -> (i32, i32, i32) {
    %c0_i32 = arith.constant 0 : i32
    %c0_i32_0 = arith.constant 0 : i32
    %c0_i32_1 = arith.constant 0 : i32
    return %arg0, %c0_i32, %c0_i32_0 : i32, i32, i32
  }
}

</mosaic_0001>

<bundles_post_ra>
// kernel: _mse_loss_impl.1
= control target key start
LH: loop header
LB: loop body
LE: loop exit
PB: predicated region body
PF: predicated region fallthrough
CT: control target
= control target key end

     0   :  { %s498_s9 = smov 0   ;;  %s500_s10 = smov 0   ;;  %s553_s0 = inlined_call_operand.vmem [shape: f32[4,512], index: 0, kind: input, shape index: {}]   ;;  %s554_s1 = inlined_call_operand.vmem [shape: f32[4,512], index: 1, kind: input, shape index: {}]   ;;  %s555_s2 = inlined_call_operand.vmem [shape: f32[2,1,1], index: 2, kind: output, shape index: {}]  }
   0x1   :  { %s502_s11 = smov 0  }
   0x2 LB: > { %s24_s12 = sadd.s32 1, %s475_s10  ;;  %p415_p0 = scmp.ge.s32.totalorder %s479_s11, 1  ;;  %s479_s11 = sphi %s502_s11, %s12_s11   ;;  %s475_s10 = sphi %s500_s10, %s559_s10   ;;  %s471_s9 = sphi %s498_s9, %s558_s9  }
   0x3   : > { %p26_p1 = scmp.ge.s32.totalorder %s24_s12, 2  ;;  %p158_p2 = scmp.lt.s32.totalorder %s479_s11, 3 }
   0x5   : > { %s561_s12 = smov (%p26_p1, %s24_s12), 0  ;;  %p159_p3 = pnand %p415_p0, %p158_p2 }
   0x6   : > { %p190_p4 = scmp.lt.s32.totalorder (!%p159_p3), %s471_s9, 0  ;;  %p211_p5 = scmp.lt.s32.totalorder (!%p159_p3), %s471_s9, 1 }
   0x7   : > { %162 = sbr.rel (%p159_p3) target bundleno = 206 (0xce), region = 28  ;;  %p426_p6 = scmp.ge.s32.totalorder (!%p159_p3), %s471_s9, 1 }
   0xc   : > { %v219_v0 = vlaneseq  ;;  %s191_s13 = scalar_select %p190_p4, %s471_s9, 0  ;;  %v481_v2 = vmov 0.0  }
   0xd   : > { %s521_s14 = scalar_select %p211_p5, %s471_s9, 1 }
   0xe   : > { %vm517_vm0 = vcmp.lt.s32.totalorder %v219_v0, 512  ;;  %s563_s13 = smov (!%p190_p4, %s191_s13), 0  ;;  %227 = sbr.rel (%p426_p6) target bundleno = 51 (0x33), region = 36 }
   0xf   : > { %223 = vst.msk [vmem:[#allocation2] sm:$0xf] %vm517_vm0, %v481_v2  ;;  %s213_s17 = scalar_lea.vmem %s555_s2, %s521_s14  ;;  %s429_s18 = sshll.u32 %s563_s13, 4 }
  0x10   : > { %s196_s21 = scalar_lea.vmem %s553_s0, %s429_s18  ;;  %s207_s24 = scalar_lea.vmem %s554_s1, %s429_s18 }
  0x13   : > { %v228_v3 = vld [vmem:[%s196_s21] sm:$0xff]  ;;  %v229_v4 = vld [vmem:[%s196_s21 + $0x8] sm:$0xff]  ;;  %vm243_vm1 = vcmask 1043456   ;;  %v482_v25 = vmov 1966171168   ;;  %v282_v36 = vshrl.u32 %v219_v0, 7 }
  0x14   : > { %v230_v5 = vld [vmem:[%s207_s24] sm:$0xff]  ;;  %v231_v6 = vld [vmem:[%s207_s24 + $0x8] sm:$0xff]  ;;  %v279_v26 = vunpack.c.l.s4 %v482_v25 }
  0x15   : > { %v232_v7 = vsub.f32 %v228_v3, %v230_v5  ;;  %v233_v8 = vsub.f32 %v229_v4, %v231_v6 }
  0x16   : > { %v280_v35 = vunpack.c.0.s8 %v279_v26  ;;  %v234_v51 = vld [vmem:[#allocation2] sm:$0xf] }
  0x17   : > { %v235_v9 = vmul.f32 %v232_v7, %v232_v7  ;;  %v236_v10 = vmul.f32 %v233_v8, %v233_v8 }
  0x18   : > { %v283_v44 = vsub.s32 %v280_v35, %v282_v36 }
  0x19   : > { %v239_v11 = vcombine.high %v235_v9, %v235_v9  ;;  %v244_v12 = vsel %vm243_vm1, %v235_v9, 0.0  ;;  %v240_v13 = vcombine.high %v236_v10, %v236_v10  ;;  %v258_v15 = vsel %vm243_vm1, %v236_v10, 0.0 }
  0x1a   : > { %v245_v14 = vrot.slane %v244_v12, 4  ;;  %v259_v17 = vrot.slane %v258_v15, 4 }
  0x1b   : > { %v251_v16 = vsel %vm243_vm1, %v239_v11, 0.0  ;;  %v265_v20 = vsel %vm243_vm1, %v240_v13, 0.0 }
  0x1c   : > { %v246_v18 = vadd.f32 %v245_v14, %v244_v12  ;;  %v252_v19 = vrot.slane %v251_v16, 4  ;;  %v260_v21 = vadd.f32 %v259_v17, %v258_v15  ;;  %v266_v22 = vrot.slane %v265_v20, 4 }
  0x1e   : > { %v247_v23 = vrot.slane %v246_v18, 2  ;;  %v253_v24 = vadd.f32 %v252_v19, %v251_v16  ;;  %v261_v27 = vrot.slane %v260_v21, 2  ;;  %v267_v28 = vadd.f32 %v266_v22, %v265_v20 }
  0x20   : > { %v248_v29 = vadd.f32 %v247_v23, %v246_v18  ;;  %v254_v30 = vrot.slane %v253_v24, 2  ;;  %v262_v31 = vadd.f32 %v261_v27, %v260_v21  ;;  %v268_v32 = vrot.slane %v267_v28, 2 }
  0x22   : > { %v249_v33 = vrot.slane %v248_v29, 1  ;;  %v255_v34 = vadd.f32 %v254_v30, %v253_v24  ;;  %v263_v37 = vrot.slane %v262_v31, 1  ;;  %v269_v38 = vadd.f32 %v268_v32, %v267_v28 }
  0x24   : > { %v250_v39 = vadd.f32 %v249_v33, %v248_v29  ;;  %v256_v40 = vrot.slane %v255_v34, 1  ;;  %v264_v41 = vadd.f32 %v263_v37, %v262_v31  ;;  %v270_v42 = vrot.slane %v269_v38, 1 }
  0x26   : > { %v257_v43 = vadd.f32 %v256_v40, %v255_v34  ;;  %v271_v45 = vadd.f32 %v270_v42, %v269_v38 }
  0x28   : > { %v276_v46 = vcombine.low %v250_v39, %v257_v43  ;;  %v277_v47 = vcombine.low %v264_v41, %v271_v45 }
  0x2a   : > { %v284_v48 = vrot.slane %v276_v46, %v283_v44  ;;  %v291_v49 = vrot.slane %v277_v47, %v283_v44 }
  0x2c   : > { %v292_v50 = vcombine.low %v284_v48, %v291_v49 }
  0x2e   : > { %v299_v52 = vrot.slane %v292_v50, %v283_v44 }
  0x30   : > { %v301_v53 = vadd.f32 %v299_v52, %v234_v51 }
  0x32   : > { %306 = vst.msk [vmem:[#allocation2] sm:$0xf] %vm517_vm0, %v301_v53 }
  0x33 PF: > { %v313_v54 = vshrl.u32 %v219_v0, 7  ;;  %vm332_vm2 = vcmask 1040384   ;;  %vm342_vm3 = vcmask 0  }
  0x35   : > { %v314_v56 = vsub.s32 0, %v313_v54  ;;  %v318_v57 = vsub.s32 1, %v313_v54  ;;  %v322_v58 = vsub.s32 2, %v313_v54  ;;  %v326_v59 = vsub.s32 3, %v313_v54 }
  0x39   : > { %v310_v55 = vld [vmem:[#allocation2] sm:$0xf] }
  0x3a   : > { %v315_v60 = vrot.slane %v310_v55, %v314_v56  ;;  %v319_v61 = vrot.slane %v310_v55, %v318_v57  ;;  %v323_v62 = vrot.slane %v310_v55, %v322_v58  ;;  %v327_v63 = vrot.slane %v310_v55, %v326_v59 }
  0x3c   : > { %v333_v2 = vsel %vm332_vm2, %v315_v60, 0.0  ;;  %v334_v3 = vsel %vm332_vm2, %v319_v61, 0.0  ;;  %v336_v4 = vsel %vm332_vm2, %v323_v62, 0.0  ;;  %v338_v1 = vsel %vm332_vm2, %v327_v63, 0.0 }
  0x3d   : > { %v335_v5 = vadd.f32 %v334_v3, %v333_v2 }
  0x3f   : > { %v337_v6 = vadd.f32 %v336_v4, %v335_v5 }
  0x41   : > { %v339_v7 = vadd.f32 %v338_v1, %v337_v6 }
  0x43   : > { %340 = vadd.xlane.f32.xlu0 %v339_v7 }
  0xcc   : > { %v341_v0 = vpop.xlane.xlu0 %340 }
  0xcd   : > { %343 = vst.msk [vmem:[%s213_s17] sm:$0x1] %vm342_vm3, %v341_v0 }
  0xce PF: > { %s12_s11 = sadd.s32 1, %s479_s11   ;;  %s558_s9 = smov %s475_s10 }
  0xcf   : > { %p9_p7 = scmp.ge.s32.totalorder %s12_s11, 4   ;;  %s559_s10 = smov %s561_s12 }
  0xd1   :  { %11 = sbr.rel (!%p9_p7) target bundleno = 2 (0x2), region = 73 }

</bundles_post_ra>
